<compile_context>
chip_gen: v7x
topology: tpu7x:2x2x1
jax: 0.10.0
libtpu: 0.0.40
codegen_flags: <defaults>
</compile_context>

<pallas_src>
import jax
import jax.numpy as jnp
from jax.experimental import pallas as pl
from jax.experimental.pallas import tpu as pltpu

DEFAULT_TILE_B = 2048  # multiple of 8; bf16 x tile ~3.7 MB padded, pipeline-friendly
IN_FEATURES = 784
HID1 = 20
HID2 = 10


def _round_up(n, m):
    return ((n + m - 1) // m) * m


def _mlp_kernel(x_ref, w1_ref, b1_ref, w2_ref, b2_ref, o_ref):
    # hidden1 (bf16 x bf16 -> f32 accumulate on the MXU), bias + sigmoid in f32
    h = jnp.dot(x_ref[...], w1_ref[...], preferred_element_type=jnp.float32)
    h = jax.nn.sigmoid(h + b1_ref[...])                      # (TILE_B, 20) f32
    # hidden2: feed bf16 into the MXU, accumulate f32, bias + sigmoid in f32
    y = jnp.dot(h.astype(w2_ref.dtype), w2_ref[...],
                preferred_element_type=jnp.float32)
    o_ref[...] = jax.nn.sigmoid(y + b2_ref[...]).astype(o_ref.dtype)


def mlp_forward(x, w1, b1, w2, b2, tile_b=DEFAULT_TILE_B,
                compute_dtype=jnp.bfloat16):
    """x: (B, C, H, W) with C*H*W == 784. Returns (B, 10) float32."""
    B = x.shape[0]
    x2d = x.reshape(B, -1)                                   # == x.view(x.size(0), -1)
    in_features = w1.shape[0]
    out_features = w2.shape[1]
    assert x2d.shape[1] == in_features, "flattened input must have 784 features"

    # bf16 streaming of the dominant tensor (x) and the weights; biases stay f32.
    x2d = x2d.astype(compute_dtype)
    w1c = w1.astype(compute_dtype)
    w2c = w2.astype(compute_dtype)
    b1c = b1.astype(jnp.float32)
    b2c = b2.astype(jnp.float32)

    # Tile size: largest multiple of 8 <= tile_b, but no bigger than needed for B.
    tb = min(tile_b, _round_up(B, 8))
    tb = max(8, (tb // 8) * 8)

    grid = (pl.cdiv(B, tb),)                                 # partial boundary block OK

    dtype_bytes = jnp.dtype(compute_dtype).itemsize
    cost = pl.CostEstimate(
        flops=2 * B * (in_features * HID1 + HID1 * out_features),
        transcendentals=B * (HID1 + out_features),           # sigmoid exp()
        bytes_accessed=(B * in_features * dtype_bytes        # x read
                        + B * out_features * 4               # f32 output write
                        + (in_features * HID1 + HID1 * out_features) * dtype_bytes
                        + (HID1 + out_features) * 4),        # weights + biases
    )

    out = pl.pallas_call(
        _mlp_kernel,
        out_shape=jax.ShapeDtypeStruct((B, out_features), jnp.float32),
        grid_spec=pltpu.PrefetchScalarGridSpec(
            num_scalar_prefetch=0,
            grid=grid,
            in_specs=[
                # Streamed, double-buffered batch tiles of x (dominant HBM traffic).
                pl.BlockSpec((tb, in_features), lambda i: (i, 0)),
                # Weights / biases: constant block index -> stay VMEM-resident.
                pl.BlockSpec(w1c.shape, lambda i: (0, 0)),
                pl.BlockSpec(b1c.shape, lambda i: (0, 0)),
                pl.BlockSpec(w2c.shape, lambda i: (0, 0)),
                pl.BlockSpec(b2c.shape, lambda i: (0, 0)),
            ],
            out_specs=pl.BlockSpec((tb, out_features), lambda i: (i, 0)),
        ),
        compiler_params=pltpu.CompilerParams(
            # Batch tiles are independent -> shardable across TCs on v7x.
            dimension_semantics=("parallel",),
        ),
        cost_estimate=cost,
    )(x2d, w1c, b1c, w2c, b2c)

    return out


def init_params(key):
    """Deterministic init mimicking nn.Linear's U(-1/sqrt(fan_in), 1/sqrt(fan_in))."""
    k1, k2, k3, k4 = jax.random.split(key, 4)
    bound1 = 1.0 / jnp.sqrt(IN_FEATURES)
    bound2 = 1.0 / jnp.sqrt(HID1)
    w1 = jax.random.uniform(k1, (IN_FEATURES, HID1), jnp.float32, -bound1, bound1)
    b1 = jax.random.uniform(k2, (1, HID1), jnp.float32, -bound1, bound1)
    w2 = jax.random.uniform(k3, (HID1, HID2), jnp.float32, -bound2, bound2)
    b2 = jax.random.uniform(k4, (1, HID2), jnp.float32, -bound2, bound2)
    return w1, b1, w2, b2


def _reference(x, w1, b1, w2, b2, compute_dtype=jnp.bfloat16):
    # Same bf16 quantization of x/weights as the kernel, f32 math, for a tight check.
    x2d = x.reshape(x.shape[0], -1).astype(compute_dtype).astype(jnp.float32)
    w1q = w1.astype(compute_dtype).astype(jnp.float32)
    w2q = w2.astype(compute_dtype).astype(jnp.float32)
    h = jax.nn.sigmoid(x2d @ w1q + b1)
    hq = h.astype(compute_dtype).astype(jnp.float32)
    return jax.nn.sigmoid(hq @ w2q + b2)


if __name__ == "__main__":
    key = jax.random.PRNGKey(0)
    kx, kp = jax.random.split(key)

    w1, b1, w2, b2 = init_params(kp)

    # Small MNIST-like input: batch=2, channels=1, 28x28 spatial -> 784 features.
    x = jax.random.normal(kx, (2, 1, 28, 28), dtype=jnp.float32)
    out = jax.block_until_ready(mlp_forward(x, w1, b1, w2, b2))
    ref = _reference(x, w1, b1, w2, b2)
    assert out.shape == (2, 10)
    assert jnp.allclose(out, ref, atol=1e-2, rtol=1e-2)

    # Exercise the partial-boundary-block path: B=20 with a small 8-row tile
    # -> grid of 3 steps, last block only 4 valid rows (no wrapper-side padding).
    x_big = jax.random.normal(jax.random.PRNGKey(1), (20, 1, 28, 28), dtype=jnp.float32)
    out_big = jax.block_until_ready(mlp_forward(x_big, w1, b1, w2, b2, tile_b=8))
    ref_big = _reference(x_big, w1, b1, w2, b2)
    assert out_big.shape == (20, 10)
    assert jnp.allclose(out_big, ref_big, atol=1e-2, rtol=1e-2)

    # Default large-tile path on the same data (single partial 2048-row tile).
    out_big2 = jax.block_until_ready(mlp_forward(x_big, w1, b1, w2, b2))
    assert jnp.allclose(out_big2, ref_big, atol=1e-2, rtol=1e-2)

    print("KERNEL_OK")
</pallas_src>

<mosaic_0001>
module attributes {stable_mosaic.version = 11 : i64} {
  func.func @_mlp_kernel(%arg0: i32, %arg1: memref<8x784xbf16, #tpu.memory_space<vmem>>, %arg2: memref<784x20xbf16, #tpu.memory_space<vmem>>, %arg3: memref<1x20xf32, #tpu.memory_space<vmem>>, %arg4: memref<20x10xbf16, #tpu.memory_space<vmem>>, %arg5: memref<1x10xf32, #tpu.memory_space<vmem>>, %arg6: memref<8x10xf32, #tpu.memory_space<vmem>>) attributes {dimension_semantics = [#tpu.dimension_semantics<parallel>], iteration_bounds = array<i64: 1>, scalar_prefetch = 0 : i64, scratch_operands = 0 : i64, tpu.core_type = #tpu.core_type<tc>, window_params = [{transform_indices = @transform_0, window_bounds = array<i64: 8, 784>}, {pipeline_mode = #tpu.pipeline_mode<synchronous>, transform_indices = @transform_1, window_bounds = array<i64: 784, 20>}, {pipeline_mode = #tpu.pipeline_mode<synchronous>, transform_indices = @transform_2, window_bounds = array<i64: 1, 20>}, {pipeline_mode = #tpu.pipeline_mode<synchronous>, transform_indices = @transform_3, window_bounds = array<i64: 20, 10>}, {pipeline_mode = #tpu.pipeline_mode<synchronous>, transform_indices = @transform_4, window_bounds = array<i64: 1, 10>}, {transform_indices = @transform_5, window_bounds = array<i64: 8, 10>}]} {
    %c0 = arith.constant 0 : index
    %c0_0 = arith.constant 0 : index
    %0 = vector.load %arg1[%c0, %c0_0] : memref<8x784xbf16, #tpu.memory_space<vmem>>, vector<8x784xbf16>
    %c0_1 = arith.constant 0 : index
    %c0_2 = arith.constant 0 : index
    %1 = vector.load %arg2[%c0_1, %c0_2] : memref<784x20xbf16, #tpu.memory_space<vmem>>, vector<784x20xbf16>
    %cst = arith.constant dense<0.000000e+00> : vector<8x20xf32>
    %2 = tpu.matmul %0, %1, %cst {dimension_numbers = #tpu.dot_dimension_numbers<[1], [0], [0], [1], [0, 0, 1, 1], [], []>} : vector<8x784xbf16>, vector<784x20xbf16>, vector<8x20xf32> -> vector<8x20xf32>
    %c0_3 = arith.constant 0 : index
    %c0_4 = arith.constant 0 : index
    %3 = vector.load %arg3[%c0_3, %c0_4] : memref<1x20xf32, #tpu.memory_space<vmem>>, vector<1x20xf32>
    %4 = vector.broadcast %3 : vector<1x20xf32> to vector<8x20xf32>
    %5 = arith.addf %2, %4 : vector<8x20xf32>
    %6 = arith.negf %5 : vector<8x20xf32>
    %7 = math.exp %6 : vector<8x20xf32>
    %cst_5 = arith.constant 1.000000e+00 : f32
    %8 = vector.broadcast %cst_5 : f32 to vector<8x20xf32>
    %9 = arith.addf %8, %7 : vector<8x20xf32>
    %10 = arith.divf %8, %9 : vector<8x20xf32>
    %11 = arith.truncf %10 : vector<8x20xf32> to vector<8x20xbf16>
    %c0_6 = arith.constant 0 : index
    %c0_7 = arith.constant 0 : index
    %12 = vector.load %arg4[%c0_6, %c0_7] : memref<20x10xbf16, #tpu.memory_space<vmem>>, vector<20x10xbf16>
    %cst_8 = arith.constant dense<0.000000e+00> : vector<8x10xf32>
    %13 = tpu.matmul %11, %12, %cst_8 {dimension_numbers = #tpu.dot_dimension_numbers<[1], [0], [0], [1], [0, 0, 1, 1], [], []>} : vector<8x20xbf16>, vector<20x10xbf16>, vector<8x10xf32> -> vector<8x10xf32>
    %c0_9 = arith.constant 0 : index
    %c0_10 = arith.constant 0 : index
    %14 = vector.load %arg5[%c0_9, %c0_10] : memref<1x10xf32, #tpu.memory_space<vmem>>, vector<1x10xf32>
    %15 = vector.broadcast %14 : vector<1x10xf32> to vector<8x10xf32>
    %16 = arith.addf %13, %15 : vector<8x10xf32>
    %17 = arith.negf %16 : vector<8x10xf32>
    %18 = math.exp %17 : vector<8x10xf32>
    %cst_11 = arith.constant 1.000000e+00 : f32
    %19 = vector.broadcast %cst_11 : f32 to vector<8x10xf32>
    %20 = arith.addf %19, %18 : vector<8x10xf32>
    %21 = arith.divf %19, %20 : vector<8x10xf32>
    %c0_12 = arith.constant 0 : index
    %c0_13 = arith.constant 0 : index
    %22 = vector.load %arg6[%c0_12, %c0_13] : memref<8x10xf32, #tpu.memory_space<vmem>>, vector<8x10xf32>
    tpu.vector_store %arg6[%c0_12, %c0_13], %21 {strides = array<i32>} : memref<8x10xf32, #tpu.memory_space<vmem>>, vector<8x10xf32>,
    return
  }
  func.func @transform_0(%arg0: i32) -> (i32, i32) {
    %c0_i32 = arith.constant 0 : i32
    %c0_i32_0 = arith.constant 0 : i32
    return %arg0, %c0_i32 : i32, i32
  }
  func.func @transform_1(%arg0: i32) -> (i32, i32) {
    %c0_i32 = arith.constant 0 : i32
    %c0_i32_0 = arith.constant 0 : i32
    %c0_i32_1 = arith.constant 0 : i32
    return %c0_i32, %c0_i32_0 : i32, i32
  }
  func.func @transform_2(%arg0: i32) -> (i32, i32) {
    %c0_i32 = arith.constant 0 : i32
    %c0_i32_0 = arith.constant 0 : i32
    %c0_i32_1 = arith.constant 0 : i32
    return %c0_i32, %c0_i32_0 : i32, i32
  }
  func.func @transform_3(%arg0: i32) -> (i32, i32) {
    %c0_i32 = arith.constant 0 : i32
    %c0_i32_0 = arith.constant 0 : i32
    %c0_i32_1 = arith.constant 0 : i32
    return %c0_i32, %c0_i32_0 : i32, i32
  }
  func.func @transform_4(%arg0: i32) -> (i32, i32) {
    %c0_i32 = arith.constant 0 : i32
    %c0_i32_0 = arith.constant 0 : i32
    %c0_i32_1 = arith.constant 0 : i32
    return %c0_i32, %c0_i32_0 : i32, i32
  }
  func.func @transform_5(%arg0: i32) -> (i32, i32) {
    %c0_i32 = arith.constant 0 : i32
    %c0_i32_0 = arith.constant 0 : i32
    return %arg0, %c0_i32 : i32, i32
  }
}

</mosaic_0001>

<bundles_post_ra>
// kernel: tpu_custom_call.1
= control target key start
LH: loop header
LB: loop body
LE: loop exit
PB: predicated region body
PF: predicated region fallthrough
CT: control target
= control target key end

     0   :  { %10 = vsyncpa [#allocation3], 0  ;;  %v142_v30 = vlaneseq  ;;  %v1001_v38 = vmov 1966171168   ;;  %v1002_v40 = vmov 0.0   ;;  %vm1003_vm0 = vmmov 0   ;;  %s1227_s0 = inlined_call_operand.vmem [shape: bf16[2,784], index: 0, kind: input, shape index: {}]   ;;  %s1228_s1 = inlined_call_operand.vmem [shape: bf16[784,20], index: 1, kind: input, shape index: {}]   ;;  %s1229_s2 = inlined_call_operand.vmem [shape: f32[1,20], index: 2, kind: input, shape index: {}]   ;;  %s1230_s3 = inlined_call_operand.vmem [shape: bf16[20,10], index: 3, kind: input, shape index: {}]   ;;  %s1231_s4 = inlined_call_operand.vmem [shape: f32[1,10], index: 4, kind: input, shape index: {}]   ;;  %s1232_s5 = inlined_call_operand.hbm [shape: f32[2,10], index: 5, kind: output, shape index: {}]  }
   0x1   :  { %v912_v0 = vld [vmem:[%s1228_s1 + $0x40] sm:$0xff]   ;;  %v916_v4 = vld [vmem:[%s1228_s1 + $0x48] sm:$0xff]   ;;  %v920_v8 = vld [vmem:[%s1228_s1 + $0x50] sm:$0xff]   ;;  %v140_v39 = vunpack.c.l.s4 %v1001_v38  ;;  %vm502_vm1 = vcmask 130048   ;;  %vm696_vm2 = vcmask 1041408   ;;  %vm692_vm3 = vcmask 162816  }
   0x2   :  { %v913_v1 = vld [vmem:[%s1228_s1] sm:$0xff]   ;;  %821 = vmatprep.subr.bf16.mxu0 %v912_v0  ;;  %v917_v5 = vld [vmem:[%s1228_s1 + $0x8] sm:$0xff]   ;;  %v921_v9 = vld [vmem:[%s1228_s1 + $0x10] sm:$0xff]   ;;  %v143_v33 = vshrl.u32 %v142_v30, 7  ;;  %vm746_vm4 = vcmask 80896  }
   0x3   :  { %v914_v2 = vld [vmem:[%s1228_s1 + $0xc0] sm:$0xff]   ;;  %822 = vmatpush3.bf16.msra.mxu0 %v913_v1  ;;  %v918_v6 = vld [vmem:[%s1228_s1 + $0xc8] sm:$0xff]   ;;  %v922_v10 = vld [vmem:[%s1228_s1 + $0xd0] sm:$0xff]   ;;  %v141_v42 = vunpack.c.0.s8 %v140_v39 }
   0x4   :  { %v915_v3 = vld [vmem:[%s1228_s1 + $0x80] sm:$0xff]   ;;  %843 = vmatprep.subr.bf16.mxu1 %v914_v2  ;;  %823 = vmatprep.subr.bf16.mxu0 %v916_v4  ;;  %v919_v7 = vld [vmem:[%s1228_s1 + $0x88] sm:$0xff]   ;;  %v923_v11 = vld [vmem:[%s1228_s1 + $0x90] sm:$0xff]  }
   0x5   :  { %844 = vmatpush3.bf16.msra.mxu1 %v915_v3  ;;  %v924_v12 = vld [vmem:[%s1228_s1 + $0x58] sm:$0xff]   ;;  %v928_v16 = vld [vmem:[%s1228_s1 + $0x60] sm:$0xff]   ;;  %v932_v20 = vld [vmem:[%s1228_s1 + $0x68] sm:$0xff]   ;;  %v144_v43 = vsub.s32 %v141_v42, %v143_v33 }
   0x6   :  { %845 = vmatprep.subr.bf16.mxu1 %v918_v6  ;;  %v925_v13 = vld [vmem:[%s1228_s1 + $0x18] sm:$0xff]   ;;  %v929_v17 = vld [vmem:[%s1228_s1 + $0x20] sm:$0xff]   ;;  %v933_v21 = vld [vmem:[%s1228_s1 + $0x28] sm:$0xff]  }
   0x7   :  { %824 = vmatpush3.bf16.msra.mxu0 %v917_v5  ;;  %v926_v14 = vld [vmem:[%s1228_s1 + $0xd8] sm:$0xff]   ;;  %v930_v18 = vld [vmem:[%s1228_s1 + $0xe0] sm:$0xff]   ;;  %v934_v22 = vld [vmem:[%s1228_s1 + $0xe8] sm:$0xff]  }
   0x8   :  { %825 = vmatprep.subr.bf16.mxu0 %v920_v8  ;;  %v927_v15 = vld [vmem:[%s1228_s1 + $0x98] sm:$0xff]   ;;  %v931_v19 = vld [vmem:[%s1228_s1 + $0xa0] sm:$0xff]   ;;  %v935_v23 = vld [vmem:[%s1228_s1 + $0xa8] sm:$0xff]  }
   0x9   :  { %846 = vmatpush3.bf16.msra.mxu1 %v919_v7  ;;  %v936_v24 = vld [vmem:[%s1228_s1 + $0x70] sm:$0xff]   ;;  %v940_v28 = vld [vmem:[%s1228_s1 + $0x78] sm:$0xff]   ;;  %v950_v34 = vld [vmem:[%s1228_s1 + $0x140] sm:$0xff]  }
   0xa   :  { %847 = vmatprep.subr.bf16.mxu1 %v922_v10  ;;  %v937_v25 = vld [vmem:[%s1228_s1 + $0x30] sm:$0xff]   ;;  %v941_v29 = vld [vmem:[%s1228_s1 + $0x38] sm:$0xff]   ;;  %v943_v35 = vld [vmem:[%s1227_s0] ss:$7 sps:$4 sm:$0xff]  }
   0xb   :  { %826 = vmatpush3.bf16.msra.mxu0 %v921_v9  ;;  %v938_v26 = vld [vmem:[%s1228_s1 + $0xf0] sm:$0xff]   ;;  %v942_v31 = vld [vmem:[%s1228_s1 + $0xf8] sm:$0xff]   ;;  %v945_v36 = vld [vmem:[%s1227_s0 + $0x4] ss:$7 sps:$4 sm:$0x77]   ;;  %v145_v44 = vrot.slane %v943_v35, %v144_v43 }
   0xc   :  { %827 = vmatprep.subr.bf16.mxu0 %v924_v12  ;;  %v939_v27 = vld [vmem:[%s1228_s1 + $0xb0] sm:$0xff]   ;;  %v949_v32 = vld [vmem:[%s1228_s1 + $0xb8] sm:$0xff]   ;;  %v152_v46 = vrot.slane %v945_v36, %v144_v43  ;;  %v951_v53 = vld [vmem:[%s1228_s1 + $0x100] sm:$0xff]  }
   0xd   :  { %848 = vmatpush3.bf16.msra.mxu1 %v923_v11  ;;  %v948_v37 = vld [vmem:[%s1227_s0 + $0x12] ss:$7 sps:$4 sm:$0x77]   ;;  %v946_v41 = vld [vmem:[%s1227_s0 + $0xe] ss:$7 sps:$4 sm:$0xff]   ;;  %v966_v62 = vld [vmem:[%s1228_s1 + $0x180] sm:$0xff]  }
   0xe   :  { %849 = vmatprep.subr.bf16.mxu1 %v926_v14  ;;  %v159_v45 = vrot.slane %v946_v41, %v144_v43  ;;  %v166_v47 = vrot.slane %v948_v37, %v144_v43  ;;  %v952_v54 = vld [vmem:[%s1228_s1 + $0x148] sm:$0xff]   ;;  %v954_v60 = vld [vmem:[%s1228_s1 + $0x150] sm:$0xff]   ;;  %v956_v0 = vld [vmem:[%s1228_s1 + $0x158] sm:$0xff]  }
   0xf   :  { %828 = vmatpush3.bf16.msra.mxu0 %v925_v13  ;;  %v953_v59 = vld [vmem:[%s1228_s1 + $0x108] sm:$0xff]   ;;  %v955_v63 = vld [vmem:[%s1228_s1 + $0x110] sm:$0xff]   ;;  %v957_v2 = vld [vmem:[%s1228_s1 + $0x118] sm:$0xff]  }
  0x10   :  { %829 = vmatprep.subr.bf16.mxu0 %v928_v16  ;;  %v168_v48 = vcombine.high %v145_v44, %v159_v45  ;;  %v167_v49 = vcombine.low %v145_v44, %v159_v45  ;;  %v170_v50 = vcombine.high %v152_v46, %v166_v47  ;;  %v169_v55 = vcombine.low %v152_v46, %v166_v47  ;;  %v958_v3 = vld [vmem:[%s1228_s1 + $0x160] sm:$0xff]   ;;  %v960_v5 = vld [vmem:[%s1228_s1 + $0x168] sm:$0xff]   ;;  %v962_v7 = vld [vmem:[%s1228_s1 + $0x170] sm:$0xff]  }
  0x11   :  { %850 = vmatpush3.bf16.msra.mxu1 %v927_v15  ;;  %v959_v4 = vld [vmem:[%s1228_s1 + $0x120] sm:$0xff]   ;;  %v961_v6 = vld [vmem:[%s1228_s1 + $0x128] sm:$0xff]   ;;  %v963_v8 = vld [vmem:[%s1228_s1 + $0x130] sm:$0xff]  }
  0x12   :  { %851 = vmatprep.subr.bf16.mxu1 %v930_v18  ;;  %v191_v51 = vrot.slane %v168_v48, %v144_v43  ;;  %v177_v52 = vrot.slane %v167_v49, %v144_v43  ;;  %v198_v58 = vrot.slane %v170_v50, %v144_v43  ;;  %v184_v61 = vrot.slane %v169_v55, %v144_v43  ;;  %v964_v9 = vld [vmem:[%s1228_s1 + $0x178] sm:$0xff]   ;;  %v967_v11 = vld [vmem:[%s1230_s3] sm:$0xff]   ;;  %v968_v12 = vld [vmem:[%s1230_s3 + $0x8] ss:$0 sps:$4 sm:$0x33]  }
  0x13   :  { %830 = vmatpush3.bf16.msra.mxu0 %v929_v17  ;;  %v965_v10 = vld [vmem:[%s1228_s1 + $0x138] sm:$0xff]   ;;  %v698_v13 = vsel %vm696_vm2, %v968_v12, 0  ;;  %v764_v15 = vld [vmem:[%s1229_s2] ss:$0 sm:$0xff] }
  0x14   :  { %831 = vmatprep.subr.bf16.mxu0 %v932_v20  ;;  %538 = vmatprep.mubr.bf16.mxu0 %v191_v51  ;;  %v201_v56 = vcombine.high %v191_v51, %v191_v51  ;;  %v199_v57 = vcombine.high %v177_v52, %v177_v52  ;;  %v200_v1 = vcombine.high %v184_v61, %v184_v61  ;;  %v816_v43 = vld [vmem:[%s1231_s4] ss:$0 sm:$0xff] }
  0x15   :  { %852 = vmatpush3.bf16.msra.mxu1 %v931_v19 }
  0x16   :  { %853 = vmatprep.subr.bf16.mxu1 %v934_v22  ;;  %578 = vmatprep.mubr.bf16.mxu1 %v201_v56 }
  0x17   :  { %832 = vmatpush3.bf16.msra.mxu0 %v933_v21 }
  0x18   :  { %833 = vmatprep.subr.bf16.mxu0 %v936_v24 }
  0x19   :  { %854 = vmatpush3.bf16.msra.mxu1 %v935_v23 }
  0x1a   :  { %855 = vmatprep.subr.bf16.mxu1 %v938_v26 }
  0x1b   :  { %834 = vmatpush3.bf16.msra.mxu0 %v937_v25 }
  0x1c   :  { %835 = vmatprep.subr.bf16.mxu0 %v940_v28 }
  0x1d   :  { %856 = vmatpush3.bf16.msra.mxu1 %v939_v27 }
  0x1e   :  { %857 = vmatprep.subr.bf16.mxu1 %v942_v31 }
  0x1f   :  { %836 = vmatpush3.bf16.msra.mxu0 %v941_v29 }
  0x20   :  { %865 = vmatprep.subr.bf16.mxu0 %v950_v34 }
  0x21   :  { %858 = vmatpush3.bf16.msra.mxu1 %v949_v32 }
  0x22   :  { %892 = vmatprep.subr.bf16.mxu1 %v1002_v40  ;;  %539 = vmatmul.mubr.bf16.vlgmr.msra.gmra.mrb[0].mxu0 %v177_v52 }
  0x23   :  { %866 = vmatpush3.bf16.msra.mxu0 %v951_v53  ;;  %618 = vmatprep.mubr.bf16.mxu0 %v198_v58 }
  0x24   :  { %579 = vmatmul.mubr.bf16.vlgmr.msra.gmra.mrb[0].mxu1 %v199_v57  ;;  %867 = vmatprep.subr.bf16.mxu0 %v952_v54 }
  0x25   :  { %894 = vmatprep.mubr.msk.bf16.mxu1 %vm1003_vm0, %v1002_v40  ;;  %893 = vmatpush3.bf16.msra.mxu1 %v966_v62 }
  0x26   :  { %898 = vmatprep.subr.bf16.mxu1 %v1002_v40 }
  0x27   :  { %868 = vmatpush3.bf16.msra.mxu0 %v953_v59 }
  0x28   :  { %869 = vmatprep.subr.bf16.mxu0 %v954_v60 }
  0x2b   :  { %870 = vmatpush3.bf16.msra.mxu0 %v955_v63 }
  0x2c   :  { %871 = vmatprep.subr.bf16.mxu0 %v956_v0  ;;  %895 = vmatmul.mubr.msk.bf16.vlgmr.msra.gmra.mrb[4].mxu1 %vm502_vm1, %v200_v1 }
  0x2d   :  { %902 = vmatprep.mubr.msk.bf16.mxu1 %vm1003_vm0, %v1002_v40  ;;  %899 = vmatpush3.bf16.msra.mxu1 %v967_v11 }
  0x2e   :  { %900 = vmatprep.subr.bf16.mxu1 %v1002_v40 }
  0x2f   :  { %872 = vmatpush3.bf16.msra.mxu0 %v957_v2 }
  0x30   :  { %873 = vmatprep.subr.bf16.mxu0 %v958_v3 }
  0x31   :  { %901 = vmatpush3.bf16.msra.mxu1 %v698_v13 }
  0x33   :  { %874 = vmatpush3.bf16.msra.mxu0 %v959_v4 }
  0x34   :  { %875 = vmatprep.subr.bf16.mxu0 %v960_v5 }
  0x37   :  { %876 = vmatpush3.bf16.msra.mxu0 %v961_v6 }
  0x38   :  { %877 = vmatprep.subr.bf16.mxu0 %v962_v7 }
  0x3b   :  { %878 = vmatpush3.bf16.msra.mxu0 %v963_v8 }
  0x3c   :  { %879 = vmatprep.subr.bf16.mxu0 %v964_v9 }
  0x3f   :  { %880 = vmatpush3.bf16.msra.mxu0 %v965_v10 }
  0x42   :  { %619 = vmatmul.mubr.bf16.vlgmr.msra.gmra.mrb[4].mxu0 %v184_v61 }
  0xf5   :  { %v837_v14 = vpop.f32.mrb[0].mxu0 }
  0xf6   :  { %v838_v16 = vpop.f32.mrb[1].mxu0 }
  0xf7   :  { %v839_v17 = vadd.f32 %v838_v16, %v837_v14  ;;  %v840_v18 = vpop.f32.mrb[2].mxu0  ;;  %v859_v19 = vpop.f32.mrb[0].mxu1 }
  0xf8   :  { %v841_v20 = vpop.f32.mrb[3].mxu0  ;;  %v860_v21 = vpop.f32.mrb[1].mxu1 }
  0xf9   :  { %v541_v22 = vadd.f32 %v839_v17, %v764_v15  ;;  %v861_v23 = vadd.f32 %v860_v21, %v859_v19  ;;  %v862_v24 = vpop.f32.mrb[2].mxu1 }
  0xfa   :  { %v863_v25 = vpop.f32.mrb[3].mxu1 }
  0xfb   :  { %v581_v26 = vadd.f32 %v861_v23, %v541_v22 }
  0xff   :  { %v660_v27 = vpop.f32.mrb[4].mxu1 }
 0x100   :  { %v896_v28 = vpop.f32.mrb[5].mxu1 }
 0x101   :  { %v663_v29 = vpop.f32.mrb[6].mxu1 }
 0x102   :  { %v897_v30 = vpop.f32.mrb[7].mxu1 }
 0x115   :  { %v881_v31 = vpop.f32.mrb[4].mxu0 }
 0x116   :  { %v882_v32 = vpop.f32.mrb[5].mxu0 }
 0x117   :  { %v883_v33 = vadd.f32 %v882_v32, %v881_v31  ;;  %v884_v34 = vpop.f32.mrb[6].mxu0 }
 0x118   :  { %v885_v35 = vpop.f32.mrb[7].mxu0 }
 0x119   :  { %v621_v36 = vadd.f32 %v883_v33, %v581_v26 }
 0x11b   :  { %v661_v37 = vadd.f32 %v660_v27, %v621_v36 }
 0x11d   :  { %v815_v38 = vmul.f32 -1.442695, %v661_v37 }
 0x11f   :  { %969 = vpow2.f32 %v815_v38 }
 0x129   :  { %v970_v39 = vpop.eup %969 }
 0x12a   :  { %v669_v40 = vadd.f32 1.0, %v970_v39 }
 0x12c   :  { %971 = vrcp.f32 %v669_v40 }
 0x136   :  { %v972_v41 = vpop.eup %971 }
 0x137   :  { %v672_v42 = vpack.c.bf16 %v972_v41, %v972_v41 }
 0x139   :  { %903 = vmatmul.mubr.msk.bf16.vlgmr.msra.gmra.mrb[8].mxu1 %vm692_vm3, %v672_v42 }
 0x20c   :  { %v734_v44 = vpop.f32.mrb[8].mxu1 }
 0x20d   :  { %v735_v45 = vadd.f32 %v816_v43, %v734_v44  ;;  %v904_v46 = vpop.f32.mrb[9].mxu1 }
 0x20e   :  { %v737_v47 = vpop.f32.mrb[10].mxu1 }
 0x20f   :  { %v820_v48 = vmul.f32 -1.442695, %v735_v45  ;;  %v905_v49 = vpop.f32.mrb[11].mxu1 }
 0x211   :  { %973 = vpow2.f32 %v820_v48 }
 0x21b   :  { %v974_v50 = vpop.eup %973 }
 0x21c   :  { %v743_v51 = vadd.f32 1.0, %v974_v50 }
 0x21e   :  { %975 = vrcp.f32 %v743_v51 }
 0x228   :  { %v976_v52 = vpop.eup %975 }
 0x229   :  { %747 = vst.msk [vmem:[#allocation2] sm:$0xff] %vm746_vm4, %v976_v52 }
 0x22a   :  { %752 = vsyncadd [#allocation3], 96  ;;  %s1004_s27 = smov [#allocation2]  }
 0x22b   :  { %s753_s28 = sshll.u32 %s1004_s27, 4  ;;  %s754_s28 = int_to_ptr.vmem [resolvable:$true] %s753_s28 }
 0x22c   :  { %s977_s29 = scalar_lea.vmem %s754_s28, 32  ;;  %s981_s4 = scalar_lea.vmem %s754_s28, 128 }
 0x22d   :  { %p978_p0 = scmp.ne.s32.totalorder %s754_s28, %s977_s29  ;;  %p982_p1 = scmp.lt.s32.totalorder %s754_s28, %s754_s28 }
 0x22e   :  { %p983_p2 = scmp.lt.s32.totalorder %s981_s4, %s977_s29 }
 0x230   :  { %p984_p3 = por %p983_p2, %p982_p1 }
 0x232   :  { %p985_p4 = pnand %p984_p3, %p978_p0 }
 0x234   :  { %988 = shalt.err (!%p985_p4)
}
 0x235   :  { %s989_s7 = scalar_lea.hbm %s1232_s5, 32 }
 0x236   :  { %p990_p5 = scmp.ne.s32.totalorder %s1232_s5, %s989_s7  ;;  %p993_p6 = scmp.lt.u32.totalorder %s989_s7, %s1232_s5 }
 0x238   :  { %p995_p7 = pnand %p993_p6, %p990_p5 }
 0x23a   :  { %998 = shalt.err (!%p995_p7)
}
 0x23b   :  { %s1005_s12 = smov 32   ;;  %s1006_s13 = smov 2  }
 0x23c   :  { %759 = dma.vmem_to_hbm [thread:$0]  %s754_s28, 32, %s1232_s5, [#allocation3], %s1005_s12, %s1005_s12, %s1006_s13  }
 0x23d   :  { %999 = dma.done.wait [#allocation3], 128  }
 0x23e   :  { %1000 = vsyncadd [#allocation3], 4294967168 }
 0x23f   :  { %763 = vsyncpa [#allocation3], 1 }

</bundles_post_ra>
